<compile_context>
chip_gen: v5e
topology: v5e:2x2
jax: 0.10.0
libtpu: 0.0.40
codegen_flags: <defaults>
</compile_context>

<pallas_src>
import math

import jax
import jax.numpy as jnp
from jax.experimental import pallas as pl
from jax.experimental.pallas import tpu as pltpu


# ---------------------------------------------------------------------------
# Kernels
# ---------------------------------------------------------------------------
def _to_channels_last_dense_kernel(x_ref, o_ref):
    # x_ref: (C, St) channels-first tile (lanes = spatial, dense).
    # o_ref: (St*C//128, 128) == row-major flattening of the (St, C) tile,
    #        i.e. the contiguous channels-last slab for this spatial range.
    y = x_ref[...].T                       # (St, C)
    o_ref[...] = y.reshape(o_ref.shape)    # lane-dense store


def _to_channels_first_dense_kernel(x_ref, o_ref):
    # x_ref: (St*C//128, 128) == row-major flattening of the (St, C) tile.
    # o_ref: (C, St) channels-first tile (lanes = spatial, dense).
    c, st = o_ref.shape
    y = x_ref[...].reshape(st, c)          # un-flatten to (St, C)
    o_ref[...] = y.T


def _transpose2d_kernel(x_ref, o_ref):
    # Lane-sparse fallback (previously validated): plain 2-D tile transpose.
    o_ref[...] = x_ref[...].T


# ---------------------------------------------------------------------------
# Tiling / VMEM planning (padded footprints!)
# ---------------------------------------------------------------------------
def _round_up(x, m):
    return -(-x // m) * m


def _sublane_multiple(itemsize):
    # f32 -> 8, bf16 -> 16, int8/fp8 -> 32
    return 8 * max(1, 4 // itemsize)


def _padded_block_bytes(shape, itemsize):
    """VMEM footprint of one block, accounting for (sublane, lane) padding."""
    if len(shape) < 2:
        return _round_up(int(shape[0]) if shape else 1, 128) * itemsize
    *lead, sub, lan = shape
    n = 1
    for d in lead:
        n *= int(d)
    return (n
            * _round_up(int(sub), _sublane_multiple(itemsize))
            * _round_up(int(lan), 128)
            * itemsize)


def _plan_tiles(S, C, itemsize, dense, n_batch,
                budget_bytes=12 * 1024 * 1024, max_lanes=16384):
    """Pick spatial tile St, padded spatial extent S_pad, and working-set bytes."""
    sub_mult = _sublane_multiple(itemsize)
    if dense:
        # The flat channels-last block is (St*C//128, 128); its second-minor
        # dim must be a sublane multiple -> St must be a multiple of `step`.
        step = 128 * (sub_mult // math.gcd(C, sub_mult))
    else:
        step = 128

    def step_bytes(st):
        cf = _padded_block_bytes((C, st), itemsize)                 # channels-first tile
        if dense:
            cl = _padded_block_bytes((st * C // 128, 128), itemsize)
        else:
            cl = _padded_block_bytes((st, C), itemsize)             # lane-sparse tile
        return cf + cl

    # Largest tile whose double-buffered (in + out) footprint fits the budget.
    k = max(1, max_lanes // step)
    while k > 1 and 2 * step_bytes(k * step) > budget_bytes:
        k -= 1
    st_max = k * step

    if S % step == 0:
        # Prefer an exact divisor of S -> no padding, no tail handling.
        st = step
        t = step
        lim = min(S, st_max)
        while t <= lim:
            if S % t == 0:
                st = t
            t += step
        s_pad = S
    else:
        st = min(st_max, _round_up(S, step))
        s_pad = _round_up(S, st)

    # v7x megacore: make sure the grid has >= 2 steps when batch == 1.
    if n_batch == 1 and s_pad // st <= 1 and S > step:
        st = _round_up(-(-S // 2), step)
        s_pad = _round_up(S, st)

    return st, s_pad, 2 * step_bytes(st)


# ---------------------------------------------------------------------------
# pallas_call wrapper
# ---------------------------------------------------------------------------
def _pallas_permute(kernel, x_arr, out_shape, grid, in_spec, out_spec,
                    logical_bytes, working_set_bytes):
    # Explicit VMEM limit derived from the padded, double-buffered footprint
    # (+ headroom).  Kept well under v7x's 64 MiB physical VMEM.
    vmem_limit = int(min(48 * 1024 * 1024,
                         max(16 * 1024 * 1024,
                             working_set_bytes + 8 * 1024 * 1024)))
    return pl.pallas_call(
        kernel,
        out_shape=out_shape,
        grid_spec=pltpu.PrefetchScalarGridSpec(
            num_scalar_prefetch=0,
            grid=grid,
            in_specs=[in_spec],
            out_specs=out_spec,
        ),
        compiler_params=pltpu.CompilerParams(
            dimension_semantics=("parallel", "parallel"),
            vmem_limit_bytes=vmem_limit,
        ),
        cost_estimate=pl.CostEstimate(
            flops=0, transcendentals=0, bytes_accessed=2 * logical_bytes
        ),
    )(x_arr)


# ---------------------------------------------------------------------------
# Dense (lane-dense channels-last slab) path
# ---------------------------------------------------------------------------
def _rearrange_dense(x, before_norm):
    itemsize = jnp.dtype(x.dtype).itemsize
    logical_bytes = x.size * itemsize

    if before_norm:
        N, C, D, H, W = x.shape
        S = D * H * W
        st, s_pad, ws = _plan_tiles(S, C, itemsize, dense=True, n_batch=N)
        x2 = x.reshape(N, C, S)                                   # free merge of D,H,W
        if s_pad != S:
            x2 = jnp.pad(x2, ((0, 0), (0, 0), (0, s_pad - S)))
        grid = (N, s_pad // st)
        in_spec = pl.BlockSpec((pl.Squeezed(), C, st), lambda n, s: (n, 0, s))
        out_spec = pl.BlockSpec((pl.Squeezed(), st * C // 128, 128),
                                lambda n, s: (n, s, 0))
        out_shape = jax.ShapeDtypeStruct((N, s_pad * C // 128, 128), x.dtype)
        yf = _pallas_permute(_to_channels_last_dense_kernel, x2, out_shape,
                             grid, in_spec, out_spec, logical_bytes, ws)
        y = yf.reshape(N, s_pad, C)                               # free
        if s_pad != S:
            y = y[:, :S, :]
        return y.reshape(N, D, H, W, C)                           # free split of S
    else:
        N, D, H, W, C = x.shape
        S = D * H * W
        st, s_pad, ws = _plan_tiles(S, C, itemsize, dense=True, n_batch=N)
        x2 = x.reshape(N, S, C)                                   # free merge of D,H,W
        if s_pad != S:
            x2 = jnp.pad(x2, ((0, 0), (0, s_pad - S), (0, 0)))
        xf = x2.reshape(N, s_pad * C // 128, 128)                 # free flatten
        grid = (N, s_pad // st)
        in_spec = pl.BlockSpec((pl.Squeezed(), st * C // 128, 128),
                               lambda n, s: (n, s, 0))
        out_spec = pl.BlockSpec((pl.Squeezed(), C, st), lambda n, s: (n, 0, s))
        out_shape = jax.ShapeDtypeStruct((N, C, s_pad), x.dtype)
        y2 = _pallas_permute(_to_channels_first_dense_kernel, xf, out_shape,
                             grid, in_spec, out_spec, logical_bytes, ws)
        if s_pad != S:
            y2 = y2[:, :, :S]
        return y2.reshape(N, C, D, H, W)                          # free split of S


# ---------------------------------------------------------------------------
# Lane-sparse fallback path (previously validated formulation)
# ---------------------------------------------------------------------------
def _rearrange_sparse(x, before_norm):
    itemsize = jnp.dtype(x.dtype).itemsize
    logical_bytes = x.size * itemsize

    if before_norm:
        N, C, D, H, W = x.shape
        S = D * H * W
        st, s_pad, ws = _plan_tiles(S, C, itemsize, dense=False, n_batch=N)
        x2 = x.reshape(N, C, S)
        if s_pad != S:
            x2 = jnp.pad(x2, ((0, 0), (0, 0), (0, s_pad - S)))
        grid = (N, s_pad // st)
        in_spec = pl.BlockSpec((pl.Squeezed(), C, st), lambda n, s: (n, 0, s))
        out_spec = pl.BlockSpec((pl.Squeezed(), st, C), lambda n, s: (n, s, 0))
        out_shape = jax.ShapeDtypeStruct((N, s_pad, C), x.dtype)
        y2 = _pallas_permute(_transpose2d_kernel, x2, out_shape, grid,
                             in_spec, out_spec, logical_bytes, ws)
        if s_pad != S:
            y2 = y2[:, :S, :]
        return y2.reshape(N, D, H, W, C)
    else:
        N, D, H, W, C = x.shape
        S = D * H * W
        st, s_pad, ws = _plan_tiles(S, C, itemsize, dense=False, n_batch=N)
        x2 = x.reshape(N, S, C)
        if s_pad != S:
            x2 = jnp.pad(x2, ((0, 0), (0, s_pad - S), (0, 0)))
        grid = (N, s_pad // st)
        in_spec = pl.BlockSpec((pl.Squeezed(), st, C), lambda n, s: (n, s, 0))
        out_spec = pl.BlockSpec((pl.Squeezed(), C, st), lambda n, s: (n, 0, s))
        out_shape = jax.ShapeDtypeStruct((N, C, s_pad), x.dtype)
        y2 = _pallas_permute(_transpose2d_kernel, x2, out_shape, grid,
                             in_spec, out_spec, logical_bytes, ws)
        if s_pad != S:
            y2 = y2[:, :, :S]
        return y2.reshape(N, C, D, H, W)


# ---------------------------------------------------------------------------
# Public wrapper
# ---------------------------------------------------------------------------
_DENSE_PATH_OK = None   # None = untried; True/False cached after first attempt


def rearrange_pallas(x, before_norm=True):
    """Pallas equivalent of Rearrange(before_norm).forward(x)."""
    global _DENSE_PATH_OK
    if _DENSE_PATH_OK is not False:
        try:
            out = _rearrange_dense(x, before_norm)
            if _DENSE_PATH_OK is None:
                out = jax.block_until_ready(out)   # force compile on first use
                _DENSE_PATH_OK = True
            return out
        except Exception:
            # Mosaic build cannot lower the in-kernel dense interleave; use the
            # validated lane-sparse formulation (still with fixed VMEM budget).
            _DENSE_PATH_OK = False
    return _rearrange_sparse(x, before_norm)


if __name__ == "__main__":
    key = jax.random.PRNGKey(0)
    N, C, D, H, W = 2, 4, 8, 16, 16
    x = jax.random.normal(key, (N, C, D, H, W), dtype=jnp.float32)

    # before_norm=True: n c d h w -> n d h w c
    y = jax.block_until_ready(rearrange_pallas(x, before_norm=True))
    y_ref = jnp.transpose(x, (0, 2, 3, 4, 1))
    assert y.shape == (N, D, H, W, C), y.shape
    assert jnp.array_equal(y, y_ref), "before_norm=True mismatch"

    # before_norm=False: n d h w c -> n c d h w  (round trip back to x)
    z = jax.block_until_ready(rearrange_pallas(y, before_norm=False))
    assert z.shape == (N, C, D, H, W), z.shape
    assert jnp.array_equal(z, x), "before_norm=False mismatch"

    print("KERNEL_OK")
</pallas_src>

<mosaic_0001>
module attributes {stable_mosaic.version = 11 : i64} {
  func.func @_to_channels_last_dense_kernel(%arg0: i32, %arg1: i32, %arg2: memref<1x4x2048xf32, #tpu.memory_space<vmem>>, %arg3: memref<1x64x128xf32, #tpu.memory_space<vmem>>) attributes {dimension_semantics = [#tpu.dimension_semantics<parallel>, #tpu.dimension_semantics<parallel>], iteration_bounds = array<i64: 2, 1>, scalar_prefetch = 0 : i64, scratch_operands = 0 : i64, tpu.core_type = #tpu.core_type<tc>, window_params = [{transform_indices = @transform_0, window_bounds = array<i64: 1, 4, 2048>}, {transform_indices = @transform_1, window_bounds = array<i64: 1, 64, 128>}]} {
    %c0 = arith.constant 0 : index
    %c0_0 = arith.constant 0 : index
    %c0_1 = arith.constant 0 : index
    %0 = vector.load %arg2[%c0, %c0_0, %c0_1] : memref<1x4x2048xf32, #tpu.memory_space<vmem>>, vector<1x4x2048xf32>
    %1 = vector.shape_cast %0 : vector<1x4x2048xf32> to vector<4x2048xf32>
    %2 = tpu.transpose %1, [1, 0] : vector<4x2048xf32> -> vector<2048x4xf32>
    %3 = vector.shape_cast %2 : vector<2048x4xf32> to vector<64x128xf32>
    %c0_2 = arith.constant 0 : index
    %c0_3 = arith.constant 0 : index
    %c0_4 = arith.constant 0 : index
    %4 = vector.load %arg3[%c0_2, %c0_3, %c0_4] : memref<1x64x128xf32, #tpu.memory_space<vmem>>, vector<1x64x128xf32>
    %5 = vector.shape_cast %4 : vector<1x64x128xf32> to vector<64x128xf32>
    %6 = vector.shape_cast %3 : vector<64x128xf32> to vector<1x64x128xf32>
    tpu.vector_store %arg3[%c0_2, %c0_3, %c0_4], %6 {strides = array<i32>} : memref<1x64x128xf32, #tpu.memory_space<vmem>>, vector<1x64x128xf32>,
    return
  }
  func.func @transform_0(%arg0: i32, %arg1: i32) -> (i32, i32, i32) {
    %c0_i32 = arith.constant 0 : i32
    %c0_i32_0 = arith.constant 0 : i32
    return %arg0, %c0_i32, %arg1 : i32, i32, i32
  }
  func.func @transform_1(%arg0: i32, %arg1: i32) -> (i32, i32, i32) {
    %c0_i32 = arith.constant 0 : i32
    %c0_i32_0 = arith.constant 0 : i32
    return %arg0, %arg1, %c0_i32 : i32, i32, i32
  }
}

module attributes {stable_mosaic.version = 11 : i64} {
  func.func @_transpose2d_kernel(%arg0: i32, %arg1: i32, %arg2: memref<1x4x2048xf32, #tpu.memory_space<vmem>>, %arg3: memref<1x2048x4xf32, #tpu.memory_space<vmem>>) attributes {dimension_semantics = [#tpu.dimension_semantics<parallel>, #tpu.dimension_semantics<parallel>], iteration_bounds = array<i64: 2, 1>, scalar_prefetch = 0 : i64, scratch_operands = 0 : i64, tpu.core_type = #tpu.core_type<tc>, window_params = [{transform_indices = @transform_0, window_bounds = array<i64: 1, 4, 2048>}, {transform_indices = @transform_1, window_bounds = array<i64: 1, 2048, 4>}]} {
    %c0 = arith.constant 0 : index
    %c0_0 = arith.constant 0 : index
    %c0_1 = arith.constant 0 : index
    %0 = vector.load %arg2[%c0, %c0_0, %c0_1] : memref<1x4x2048xf32, #tpu.memory_space<vmem>>, vector<1x4x2048xf32>
    %1 = vector.shape_cast %0 : vector<1x4x2048xf32> to vector<4x2048xf32>
    %2 = tpu.transpose %1, [1, 0] : vector<4x2048xf32> -> vector<2048x4xf32>
    %c0_2 = arith.constant 0 : index
    %c0_3 = arith.constant 0 : index
    %c0_4 = arith.constant 0 : index
    %3 = vector.load %arg3[%c0_2, %c0_3, %c0_4] : memref<1x2048x4xf32, #tpu.memory_space<vmem>>, vector<1x2048x4xf32>
    %4 = vector.shape_cast %3 : vector<1x2048x4xf32> to vector<2048x4xf32>
    %5 = vector.shape_cast %2 : vector<2048x4xf32> to vector<1x2048x4xf32>
    tpu.vector_store %arg3[%c0_2, %c0_3, %c0_4], %5 {strides = array<i32>} : memref<1x2048x4xf32, #tpu.memory_space<vmem>>, vector<1x2048x4xf32>,
    return
  }
  func.func @transform_0(%arg0: i32, %arg1: i32) -> (i32, i32, i32) {
    %c0_i32 = arith.constant 0 : i32
    %c0_i32_0 = arith.constant 0 : i32
    return %arg0, %c0_i32, %arg1 : i32, i32, i32
  }
  func.func @transform_1(%arg0: i32, %arg1: i32) -> (i32, i32, i32) {
    %c0_i32 = arith.constant 0 : i32
    %c0_i32_0 = arith.constant 0 : i32
    return %arg0, %arg1, %c0_i32 : i32, i32, i32
  }
}

</mosaic_0001>

<bundles_post_ra>
// kernel: tpu_custom_call.1
= control target key start
LH: loop header
LB: loop body
LE: loop exit
PB: predicated region body
PF: predicated region fallthrough
CT: control target
= control target key end

     0   :  { %6 = vsyncpa [#allocation3], 0  ;;  %s1863_s0 = inlined_call_operand.hbm [shape: f32[2,4,2048], index: 0, kind: input, shape index: {}]   ;;  %s1864_s1 = inlined_call_operand.vmem [shape: f32[2,2048,4], index: 1, kind: output, shape index: {}]  }
   0x1   :  { %8 = vsyncpa [#allocation3 + $0x1], 0  ;;  %s1251_s6 = smov 0   ;;  %s1253_s7 = smov 0  }
   0x2   :  { %s1255_s8 = smov 0   ;;  %s1257_s9 = smov 0  }
   0x3   :  { %s1259_s10 = smov 0   ;;  %s1261_s11 = smov 0  }
   0x4 LB: > { %s1088_s12 = sadd.s32 4294967295, %s1239_s11   ;;  %s26_s13 = sadd.s32 1, %s1235_s10  ;;  %s1239_s11 = sphi %s1261_s11, %s14_s11   ;;  %s1235_s10 = sphi %s1259_s10, %s1871_s10   ;;  %s1231_s9 = sphi %s1257_s9, %s1870_s9   ;;  %s1227_s8 = sphi %s1255_s8, %s1869_s8   ;;  %s1223_s7 = sphi %s1253_s7, %s1868_s7   ;;  %s1219_s6 = sphi %s1251_s6, %s1867_s6  }
   0x5   : > { %p28_p0 = scmp.ge.s32.totalorder %s26_s13, 2  ;;  %s35_s14 = sadd.s32 1, %s1227_s8 }
   0x6   : > { %p42_p1 = scmp.ne.s32.totalorder %s1227_s8, %s1223_s7  ;;  %p43_p2 = scmp.eq.s32.totalorder %s1239_s11, 0 }
   0x7   : > { %s1873_s13 = smov (%p28_p0, %s26_s13), 0  ;;  %p48_p4 = scmp.ne.s32.totalorder %s1223_s7, %s1219_s6 }
   0x8   : > { %p1287_p3 = por %p43_p2, %p42_p1  ;;  %s30_s16 = ssub.s32 %s1235_s10, %s1873_s13 }
   0x9   : > { %p49_p5 = scmp.eq.s32.totalorder %s1088_s12, 0  ;;  %p33_p6 = scmp.eq.s32.totalorder %s30_s16, 0 }
   0xa   : > { %p1109_p8 = scmp.lt.s32.totalorder %s1239_s11, 2  ;;  %s100_s19 = sand.u32 1, %s1227_s8  }
   0xb   : > { %p1294_p7 = por %p49_p5, %p48_p4  ;;  %s1101_s20 = sshll.u32 %s1235_s10, 6 }
   0xc   : > { %s1300_s18 = scalar_select %p33_p6, %s1227_s8, %s35_s14  }
   0xd   : > { %s1092_s21 = sshll.u32 %s100_s19, 6  ;;  %s111_s24 = scalar_lea.hbm %s1863_s0, %s1101_s20 }
   0xe   : > { %s113_s25 = sshll.u32 %s111_s24, 4  ;;  %s104_s26 = scalar_lea.vmem [#allocation2], %s1092_s21  ;;  %s114_s25 = int_to_ptr.hbm [resolvable:$true] %s113_s25 }
   0xf   : > { %s115_s27 = sshll.u32 %s104_s26, 4  ;;  %p1106_p9 = pnand %p1109_p8, %p1287_p3  ;;  %s116_s27 = int_to_ptr.vmem [resolvable:$true] %s115_s27 }
  0x10   : > { %p1095_p10 = scmp.ge.s32.totalorder %s1239_s11, 1  ;;  %p120_p11 = scmp.lt.s32.totalorder %s1239_s11, 3 }
  0x11   : > { %s101_s28 = scalar_lea.sflag [#allocation3], %s100_s19 }
  0x12   : > { %1108 = dma.hbm_to_vmem [thread:$0]  (!%p1106_p9), %s114_s25, 1024, %s116_s27, %s101_s28  }
  0x13   : > { %p121_p12 = pnand %p1095_p10, %p120_p11 }
  0x14   : > { %s126_s29 = sand.u32 (!%p121_p12), 1, %s1223_s7  }
  0x15   : > { %124 = sbr.rel (%p121_p12) target bundleno = 962 (0x3c2), region = 24  ;;  %s1096_s30 = sshll.u32 (!%p121_p12), %s126_s29, 6 }
  0x16   : > { %s127_s2 = scalar_lea.sflag (!%p121_p12), [#allocation3], %s126_s29  ;;  %s1312_s3 = scalar_lea.vmem (!%p121_p12), [#allocation2], %s1096_s30 }
  0x1a   : > { %1214 = dma.done.wait (%p1294_p7), %s127_s2, 1024  }
  0x1b   : > { %1216 = vsyncadd (%p1294_p7), %s127_s2, 4294966272  ;;  %v165_v0 = vld [vmem:[%s1312_s3] sm:$0xff]  ;;  %v166_v1 = vld [vmem:[%s1312_s3 + $0x8] sm:$0xff]  ;;  %p156_p13 = scmp.lt.s32.totalorder %s1231_s9, 1  ;;  %vm736_vm0 = vcmask 31744  }
  0x1c   : > { %181 = vst [vmem:[#allocation1] ss:$2 sm:$0xff] %v165_v0  ;;  %v169_v2 = vld [vmem:[%s1312_s3 + $0x20] sm:$0xff]  ;;  %v167_v6 = vld [vmem:[%s1312_s3 + $0x10] sm:$0xff]  ;;  %v168_v15 = vld [vmem:[%s1312_s3 + $0x18] sm:$0xff] }
  0x1d   : > { %183 = vst [vmem:[#allocation1 + $0x10] ss:$2 sm:$0xff] %v166_v1  ;;  %s1875_s9 = smov (!%p156_p13, %s1231_s9), 1  ;;  %v170_v17 = vld [vmem:[%s1312_s3 + $0x28] sm:$0xff]  ;;  %v171_v20 = vld [vmem:[%s1312_s3 + $0x30] sm:$0xff]  ;;  %v172_v62 = vld [vmem:[%s1312_s3 + $0x38] sm:$0xff] }
  0x1e   : > { %185 = vst [vmem:[#allocation1 + $0x20] ss:$2 sm:$0xff] %v167_v6  ;;  %s1102_s4 = sshll.u32 %s1875_s9, 11 }
  0x1f   : > { %s1327_s12 = scalar_lea.vmem %s1864_s1, %s1102_s4  ;;  %187 = vst [vmem:[#allocation1 + $0x30] ss:$2 sm:$0xff] %v168_v15 }
  0x23   : > { %v188_v3 = vld.sshfl [vmem:[#allocation1] sm:$0xff pattern:$0x75316420]  ;;  %v189_v4 = vld.sshfl [vmem:[#allocation1 + $0x8] sm:$0xff pattern:$0x75316420] }
  0x24   : > { %224 = vxpose.xlu0.b32.start.end [1/1] (short) %v188_v3, 128  ;;  %v190_v5 = vld.sshfl [vmem:[#allocation1 + $0x10] sm:$0xff pattern:$0x75316420]  ;;  %196 = vst [vmem:[#allocation1] ss:$2 sm:$0xff] %v169_v2 }
  0x25   : > { %288 = vxpose.xlu1.b32.start.end [1/1] (short) %v190_v5, 128  ;;  %v192_v7 = vld.sshfl [vmem:[#allocation1 + $0x20] sm:$0xff pattern:$0x75316420]  ;;  %v191_v18 = vld.sshfl [vmem:[#allocation1 + $0x18] sm:$0xff pattern:$0x75316420] }
  0x26   : > { %352 = vxpose.xlu2.b32.start.end [1/1] (short) %v192_v7, 128  ;;  %197 = vst [vmem:[#allocation1 + $0x10] ss:$2 sm:$0xff] %v170_v17  ;;  %v193_v21 = vld.sshfl [vmem:[#allocation1 + $0x28] sm:$0xff pattern:$0x75316420] }
  0x27   : > { %198 = vst [vmem:[#allocation1 + $0x20] ss:$2 sm:$0xff] %v171_v20  ;;  %v194_v25 = vld.sshfl [vmem:[#allocation1 + $0x30] sm:$0xff pattern:$0x75316420] }
  0x28   : > { %v195_v63 = vld.sshfl [vmem:[#allocation1 + $0x38] sm:$0xff pattern:$0x75316420] }
  0x29   : > { %199 = vst [vmem:[#allocation1 + $0x30] ss:$2 sm:$0xff] %v172_v62 }
  0x2b   : > { %v200_v3 = vld.sshfl [vmem:[#allocation1] sm:$0xff pattern:$0x75316420] }
  0xa4   : > { %256 = vxpose.xlu0.b32.start.end [1/1] (short) %v189_v4, 128 }
  0xa5   : > { %320 = vxpose.xlu1.b32.start.end [1/1] (short) %v191_v18, 128 }
  0xa6   : > { %384 = vxpose.xlu2.b32.start.end [1/1] (short) %v193_v21, 128 }
  0xbf   : > { %v368_v27 = vpop.trf.xlu2 }
  0xc0   : > { %801 = vst.msk [vmem:[%s1327_s12 + $0x200] sm:$0xff] %vm736_vm0, %v368_v27 }
  0xc7   : > { %v369_v30 = vpop.trf.xlu2 }
  0xc8   : > { %v240_v8 = vpop.trf.xlu0  ;;  %802 = vst.msk [vmem:[%s1327_s12 + $0x208] sm:$0xff] %vm736_vm0, %v369_v30 }
  0xc9   : > { %737 = vst.msk [vmem:[%s1327_s12] sm:$0xff] %vm736_vm0, %v240_v8  ;;  %v304_v26 = vpop.trf.xlu1 }
  0xca   : > { %769 = vst.msk [vmem:[%s1327_s12 + $0x100] sm:$0xff] %vm736_vm0, %v304_v26 }
  0xcf   : > { %v370_v33 = vpop.trf.xlu2 }
  0xd0   : > { %v241_v9 = vpop.trf.xlu0  ;;  %803 = vst.msk [vmem:[%s1327_s12 + $0x210] sm:$0xff] %vm736_vm0, %v370_v33 }
  0xd1   : > { %738 = vst.msk [vmem:[%s1327_s12 + $0x8] sm:$0xff] %vm736_vm0, %v241_v9  ;;  %v305_v29 = vpop.trf.xlu1 }
  0xd2   : > { %770 = vst.msk [vmem:[%s1327_s12 + $0x108] sm:$0xff] %vm736_vm0, %v305_v29 }
  0xd7   : > { %v371_v36 = vpop.trf.xlu2 }
  0xd8   : > { %v242_v10 = vpop.trf.xlu0  ;;  %804 = vst.msk [vmem:[%s1327_s12 + $0x218] sm:$0xff] %vm736_vm0, %v371_v36 }
  0xd9   : > { %739 = vst.msk [vmem:[%s1327_s12 + $0x10] sm:$0xff] %vm736_vm0, %v242_v10  ;;  %v306_v32 = vpop.trf.xlu1 }
  0xda   : > { %771 = vst.msk [vmem:[%s1327_s12 + $0x110] sm:$0xff] %vm736_vm0, %v306_v32 }
  0xdf   : > { %v372_v39 = vpop.trf.xlu2 }
  0xe0   : > { %v243_v11 = vpop.trf.xlu0  ;;  %805 = vst.msk [vmem:[%s1327_s12 + $0x220] sm:$0xff] %vm736_vm0, %v372_v39 }
  0xe1   : > { %740 = vst.msk [vmem:[%s1327_s12 + $0x18] sm:$0xff] %vm736_vm0, %v243_v11  ;;  %v307_v35 = vpop.trf.xlu1 }
  0xe2   : > { %772 = vst.msk [vmem:[%s1327_s12 + $0x118] sm:$0xff] %vm736_vm0, %v307_v35 }
  0xe7   : > { %v373_v42 = vpop.trf.xlu2 }
  0xe8   : > { %v244_v12 = vpop.trf.xlu0  ;;  %806 = vst.msk [vmem:[%s1327_s12 + $0x228] sm:$0xff] %vm736_vm0, %v373_v42 }
  0xe9   : > { %741 = vst.msk [vmem:[%s1327_s12 + $0x20] sm:$0xff] %vm736_vm0, %v244_v12  ;;  %v308_v38 = vpop.trf.xlu1 }
  0xea   : > { %773 = vst.msk [vmem:[%s1327_s12 + $0x120] sm:$0xff] %vm736_vm0, %v308_v38 }
  0xef   : > { %v374_v45 = vpop.trf.xlu2 }
  0xf0   : > { %v245_v13 = vpop.trf.xlu0  ;;  %807 = vst.msk [vmem:[%s1327_s12 + $0x230] sm:$0xff] %vm736_vm0, %v374_v45 }
  0xf1   : > { %742 = vst.msk [vmem:[%s1327_s12 + $0x28] sm:$0xff] %vm736_vm0, %v245_v13  ;;  %v309_v41 = vpop.trf.xlu1  ;;  %v201_v13 = vld.sshfl [vmem:[#allocation1 + $0x8] sm:$0xff pattern:$0x75316420] }
  0xf2   : > { %774 = vst.msk [vmem:[%s1327_s12 + $0x128] sm:$0xff] %vm736_vm0, %v309_v41 }
  0xf7   : > { %v375_v48 = vpop.trf.xlu2 }
  0xf8   : > { %v246_v14 = vpop.trf.xlu0  ;;  %808 = vst.msk [vmem:[%s1327_s12 + $0x238] sm:$0xff] %vm736_vm0, %v375_v48 }
  0xf9   : > { %743 = vst.msk [vmem:[%s1327_s12 + $0x30] sm:$0xff] %vm736_vm0, %v246_v14  ;;  %v310_v44 = vpop.trf.xlu1 }
  0xfa   : > { %775 = vst.msk [vmem:[%s1327_s12 + $0x130] sm:$0xff] %vm736_vm0, %v310_v44 }
  0xff   : > { %v376_v51 = vpop.trf.xlu2 }
 0x100   : > { %v247_v16 = vpop.trf.xlu0  ;;  %809 = vst.msk [vmem:[%s1327_s12 + $0x240] sm:$0xff] %vm736_vm0, %v376_v51 }
 0x101   : > { %744 = vst.msk [vmem:[%s1327_s12 + $0x38] sm:$0xff] %vm736_vm0, %v247_v16  ;;  %v311_v47 = vpop.trf.xlu1 }
 0x102   : > { %776 = vst.msk [vmem:[%s1327_s12 + $0x138] sm:$0xff] %vm736_vm0, %v311_v47 }
 0x107   : > { %v377_v54 = vpop.trf.xlu2 }
 0x108   : > { %v248_v19 = vpop.trf.xlu0  ;;  %810 = vst.msk [vmem:[%s1327_s12 + $0x248] sm:$0xff] %vm736_vm0, %v377_v54  ;;  %v203_v54 = vld.sshfl [vmem:[#allocation1 + $0x18] sm:$0xff pattern:$0x75316420] }
 0x109   : > { %745 = vst.msk [vmem:[%s1327_s12 + $0x40] sm:$0xff] %vm736_vm0, %v248_v19  ;;  %v312_v50 = vpop.trf.xlu1 }
 0x10a   : > { %777 = vst.msk [vmem:[%s1327_s12 + $0x140] sm:$0xff] %vm736_vm0, %v312_v50  ;;  %v202_v50 = vld.sshfl [vmem:[#allocation1 + $0x10] sm:$0xff pattern:$0x75316420] }
 0x10f   : > { %v378_v57 = vpop.trf.xlu2 }
 0x110   : > { %v249_v22 = vpop.trf.xlu0  ;;  %811 = vst.msk [vmem:[%s1327_s12 + $0x250] sm:$0xff] %vm736_vm0, %v378_v57 }
 0x111   : > { %746 = vst.msk [vmem:[%s1327_s12 + $0x48] sm:$0xff] %vm736_vm0, %v249_v22  ;;  %v313_v53 = vpop.trf.xlu1 }
 0x112   : > { %778 = vst.msk [vmem:[%s1327_s12 + $0x148] sm:$0xff] %vm736_vm0, %v313_v53 }
 0x117   : > { %v379_v60 = vpop.trf.xlu2 }
 0x118   : > { %v250_v23 = vpop.trf.xlu0  ;;  %812 = vst.msk [vmem:[%s1327_s12 + $0x258] sm:$0xff] %vm736_vm0, %v379_v60 }
 0x119   : > { %747 = vst.msk [vmem:[%s1327_s12 + $0x50] sm:$0xff] %vm736_vm0, %v250_v23  ;;  %v314_v56 = vpop.trf.xlu1 }
 0x11a   : > { %779 = vst.msk [vmem:[%s1327_s12 + $0x150] sm:$0xff] %vm736_vm0, %v314_v56 }
 0x11f   : > { %v380_v1 = vpop.trf.xlu2 }
 0x120   : > { %v251_v24 = vpop.trf.xlu0  ;;  %813 = vst.msk [vmem:[%s1327_s12 + $0x260] sm:$0xff] %vm736_vm0, %v380_v1 }
 0x121   : > { %748 = vst.msk [vmem:[%s1327_s12 + $0x58] sm:$0xff] %vm736_vm0, %v251_v24  ;;  %v315_v59 = vpop.trf.xlu1 }
 0x122   : > { %780 = vst.msk [vmem:[%s1327_s12 + $0x158] sm:$0xff] %vm736_vm0, %v315_v59 }
 0x124   : > { %416 = vxpose.xlu0.b32.start.end [1/1] (short) %v194_v25, 128 }
 0x125   : > { %448 = vxpose.xlu1.b32.start.end [1/1] (short) %v195_v63, 128 }
 0x126   : > { %480 = vxpose.xlu2.b32.start.end [1/1] (short) %v200_v3, 128 }
 0x127   : > { %v381_v5 = vpop.trf.xlu2 }
 0x128   : > { %v252_v28 = vpop.trf.xlu0  ;;  %814 = vst.msk [vmem:[%s1327_s12 + $0x268] sm:$0xff] %vm736_vm0, %v381_v5 }
 0x129   : > { %749 = vst.msk [vmem:[%s1327_s12 + $0x60] sm:$0xff] %vm736_vm0, %v252_v28  ;;  %v316_v0 = vpop.trf.xlu1 }
 0x12a   : > { %781 = vst.msk [vmem:[%s1327_s12 + $0x160] sm:$0xff] %vm736_vm0, %v316_v0  ;;  %v204_v0 = vld.sshfl [vmem:[#allocation1 + $0x20] sm:$0xff pattern:$0x75316420] }
 0x12f   : > { %v382_v8 = vpop.trf.xlu2 }
 0x130   : > { %v253_v31 = vpop.trf.xlu0  ;;  %815 = vst.msk [vmem:[%s1327_s12 + $0x270] sm:$0xff] %vm736_vm0, %v382_v8 }
 0x131   : > { %750 = vst.msk [vmem:[%s1327_s12 + $0x68] sm:$0xff] %vm736_vm0, %v253_v31  ;;  %v317_v4 = vpop.trf.xlu1 }
 0x132   : > { %782 = vst.msk [vmem:[%s1327_s12 + $0x168] sm:$0xff] %vm736_vm0, %v317_v4 }
 0x137   : > { %v383_v11 = vpop.trf.xlu2 }
 0x138   : > { %v254_v34 = vpop.trf.xlu0  ;;  %816 = vst.msk [vmem:[%s1327_s12 + $0x278] sm:$0xff] %vm736_vm0, %v383_v11 }
 0x139   : > { %751 = vst.msk [vmem:[%s1327_s12 + $0x70] sm:$0xff] %vm736_vm0, %v254_v34  ;;  %v318_v7 = vpop.trf.xlu1 }
 0x13a   : > { %783 = vst.msk [vmem:[%s1327_s12 + $0x170] sm:$0xff] %vm736_vm0, %v318_v7 }
 0x13f   : > { %v400_v14 = vpop.trf.xlu2 }
 0x140   : > { %v255_v37 = vpop.trf.xlu0  ;;  %817 = vst.msk [vmem:[%s1327_s12 + $0x280] sm:$0xff] %vm736_vm0, %v400_v14 }
 0x141   : > { %752 = vst.msk [vmem:[%s1327_s12 + $0x78] sm:$0xff] %vm736_vm0, %v255_v37  ;;  %v319_v10 = vpop.trf.xlu1 }
 0x142   : > { %784 = vst.msk [vmem:[%s1327_s12 + $0x178] sm:$0xff] %vm736_vm0, %v319_v10 }
 0x147   : > { %v401_v17 = vpop.trf.xlu2 }
 0x148   : > { %v272_v40 = vpop.trf.xlu0  ;;  %818 = vst.msk [vmem:[%s1327_s12 + $0x288] sm:$0xff] %vm736_vm0, %v401_v17 }
 0x149   : > { %753 = vst.msk [vmem:[%s1327_s12 + $0x80] sm:$0xff] %vm736_vm0, %v272_v40  ;;  %v336_v15 = vpop.trf.xlu1 }
 0x14a   : > { %785 = vst.msk [vmem:[%s1327_s12 + $0x180] sm:$0xff] %vm736_vm0, %v336_v15 }
 0x14f   : > { %v402_v20 = vpop.trf.xlu2 }
 0x150   : > { %v273_v43 = vpop.trf.xlu0  ;;  %819 = vst.msk [vmem:[%s1327_s12 + $0x290] sm:$0xff] %vm736_vm0, %v402_v20 }
 0x151   : > { %754 = vst.msk [vmem:[%s1327_s12 + $0x88] sm:$0xff] %vm736_vm0, %v273_v43  ;;  %v337_v18 = vpop.trf.xlu1 }
 0x152   : > { %786 = vst.msk [vmem:[%s1327_s12 + $0x188] sm:$0xff] %vm736_vm0, %v337_v18 }
 0x157   : > { %v403_v23 = vpop.trf.xlu2 }
 0x158   : > { %v274_v46 = vpop.trf.xlu0  ;;  %820 = vst.msk [vmem:[%s1327_s12 + $0x298] sm:$0xff] %vm736_vm0, %v403_v23 }
 0x159   : > { %755 = vst.msk [vmem:[%s1327_s12 + $0x90] sm:$0xff] %vm736_vm0, %v274_v46  ;;  %v338_v21 = vpop.trf.xlu1 }
 0x15a   : > { %787 = vst.msk [vmem:[%s1327_s12 + $0x190] sm:$0xff] %vm736_vm0, %v338_v21 }
 0x15f   : > { %v404_v26 = vpop.trf.xlu2 }
 0x160   : > { %v275_v49 = vpop.trf.xlu0  ;;  %821 = vst.msk [vmem:[%s1327_s12 + $0x2a0] sm:$0xff] %vm736_vm0, %v404_v26 }
 0x161   : > { %756 = vst.msk [vmem:[%s1327_s12 + $0x98] sm:$0xff] %vm736_vm0, %v275_v49  ;;  %v339_v24 = vpop.trf.xlu1 }
 0x162   : > { %788 = vst.msk [vmem:[%s1327_s12 + $0x198] sm:$0xff] %vm736_vm0, %v339_v24 }
 0x167   : > { %v405_v29 = vpop.trf.xlu2 }
 0x168   : > { %v276_v52 = vpop.trf.xlu0  ;;  %822 = vst.msk [vmem:[%s1327_s12 + $0x2a8] sm:$0xff] %vm736_vm0, %v405_v29 }
 0x169   : > { %757 = vst.msk [vmem:[%s1327_s12 + $0xa0] sm:$0xff] %vm736_vm0, %v276_v52  ;;  %v340_v27 = vpop.trf.xlu1 }
 0x16a   : > { %789 = vst.msk [vmem:[%s1327_s12 + $0x1a0] sm:$0xff] %vm736_vm0, %v340_v27 }
 0x16f   : > { %v406_v32 = vpop.trf.xlu2 }
 0x170   : > { %v277_v55 = vpop.trf.xlu0  ;;  %823 = vst.msk [vmem:[%s1327_s12 + $0x2b0] sm:$0xff] %vm736_vm0, %v406_v32 }
 0x171   : > { %758 = vst.msk [vmem:[%s1327_s12 + $0xa8] sm:$0xff] %vm736_vm0, %v277_v55  ;;  %v341_v30 = vpop.trf.xlu1 }
 0x172   : > { %790 = vst.msk [vmem:[%s1327_s12 + $0x1a8] sm:$0xff] %vm736_vm0, %v341_v30 }
 0x177   : > { %v407_v35 = vpop.trf.xlu2 }
 0x178   : > { %v278_v58 = vpop.trf.xlu0  ;;  %824 = vst.msk [vmem:[%s1327_s12 + $0x2b8] sm:$0xff] %vm736_vm0, %v407_v35 }
 0x179   : > { %759 = vst.msk [vmem:[%s1327_s12 + $0xb0] sm:$0xff] %vm736_vm0, %v278_v58  ;;  %v342_v33 = vpop.trf.xlu1 }
 0x17a   : > { %791 = vst.msk [vmem:[%s1327_s12 + $0x1b0] sm:$0xff] %vm736_vm0, %v342_v33 }
 0x17f   : > { %v408_v38 = vpop.trf.xlu2 }
 0x180   : > { %v279_v61 = vpop.trf.xlu0  ;;  %825 = vst.msk [vmem:[%s1327_s12 + $0x2c0] sm:$0xff] %vm736_vm0, %v408_v38 }
 0x181   : > { %760 = vst.msk [vmem:[%s1327_s12 + $0xb8] sm:$0xff] %vm736_vm0, %v279_v61  ;;  %v343_v36 = vpop.trf.xlu1 }
 0x182   : > { %792 = vst.msk [vmem:[%s1327_s12 + $0x1b8] sm:$0xff] %vm736_vm0, %v343_v36 }
 0x187   : > { %v409_v41 = vpop.trf.xlu2 }
 0x188   : > { %v280_v2 = vpop.trf.xlu0  ;;  %826 = vst.msk [vmem:[%s1327_s12 + $0x2c8] sm:$0xff] %vm736_vm0, %v409_v41  ;;  %v206_v41 = vld.sshfl [vmem:[#allocation1 + $0x30] sm:$0xff pattern:$0x75316420] }
 0x189   : > { %761 = vst.msk [vmem:[%s1327_s12 + $0xc0] sm:$0xff] %vm736_vm0, %v280_v2  ;;  %v344_v39 = vpop.trf.xlu1 }
 0x18a   : > { %793 = vst.msk [vmem:[%s1327_s12 + $0x1c0] sm:$0xff] %vm736_vm0, %v344_v39 }
 0x18f   : > { %v410_v44 = vpop.trf.xlu2 }
 0x190   : > { %v281_v6 = vpop.trf.xlu0  ;;  %827 = vst.msk [vmem:[%s1327_s12 + $0x2d0] sm:$0xff] %vm736_vm0, %v410_v44 }
 0x191   : > { %762 = vst.msk [vmem:[%s1327_s12 + $0xc8] sm:$0xff] %vm736_vm0, %v281_v6  ;;  %v345_v42 = vpop.trf.xlu1 }
 0x192   : > { %794 = vst.msk [vmem:[%s1327_s12 + $0x1c8] sm:$0xff] %vm736_vm0, %v345_v42 }
 0x197   : > { %v411_v47 = vpop.trf.xlu2 }
 0x198   : > { %v282_v9 = vpop.trf.xlu0  ;;  %828 = vst.msk [vmem:[%s1327_s12 + $0x2d8] sm:$0xff] %vm736_vm0, %v411_v47 }
 0x199   : > { %763 = vst.msk [vmem:[%s1327_s12 + $0xd0] sm:$0xff] %vm736_vm0, %v282_v9  ;;  %v346_v45 = vpop.trf.xlu1 }
 0x19a   : > { %795 = vst.msk [vmem:[%s1327_s12 + $0x1d0] sm:$0xff] %vm736_vm0, %v346_v45 }
 0x19f   : > { %v412_v51 = vpop.trf.xlu2 }
 0x1a0   : > { %v283_v12 = vpop.trf.xlu0  ;;  %829 = vst.msk [vmem:[%s1327_s12 + $0x2e0] sm:$0xff] %vm736_vm0, %v412_v51  ;;  %v207_v51 = vld.sshfl [vmem:[#allocation1 + $0x38] sm:$0xff pattern:$0x75316420] }
 0x1a1   : > { %764 = vst.msk [vmem:[%s1327_s12 + $0xd8] sm:$0xff] %vm736_vm0, %v283_v12  ;;  %v347_v48 = vpop.trf.xlu1 }
 0x1a2   : > { %796 = vst.msk [vmem:[%s1327_s12 + $0x1d8] sm:$0xff] %vm736_vm0, %v347_v48 }
 0x1a4   : > { %512 = vxpose.xlu0.b32.start.end [1/1] (short) %v201_v13, 128 }
 0x1a5   : > { %544 = vxpose.xlu1.b32.start.end [1/1] (short) %v202_v50, 128 }
 0x1a6   : > { %576 = vxpose.xlu2.b32.start.end [1/1] (short) %v203_v54, 128 }
 0x1a7   : > { %v413_v55 = vpop.trf.xlu2 }
 0x1a8   : > { %v284_v16 = vpop.trf.xlu0  ;;  %830 = vst.msk [vmem:[%s1327_s12 + $0x2e8] sm:$0xff] %vm736_vm0, %v413_v55 }
 0x1a9   : > { %765 = vst.msk [vmem:[%s1327_s12 + $0xe0] sm:$0xff] %vm736_vm0, %v284_v16  ;;  %v348_v52 = vpop.trf.xlu1 }
 0x1aa   : > { %797 = vst.msk [vmem:[%s1327_s12 + $0x1e0] sm:$0xff] %vm736_vm0, %v348_v52 }
 0x1af   : > { %v414_v58 = vpop.trf.xlu2 }
 0x1b0   : > { %v285_v19 = vpop.trf.xlu0  ;;  %831 = vst.msk [vmem:[%s1327_s12 + $0x2f0] sm:$0xff] %vm736_vm0, %v414_v58 }
 0x1b1   : > { %766 = vst.msk [vmem:[%s1327_s12 + $0xe8] sm:$0xff] %vm736_vm0, %v285_v19  ;;  %v349_v56 = vpop.trf.xlu1 }
 0x1b2   : > { %798 = vst.msk [vmem:[%s1327_s12 + $0x1e8] sm:$0xff] %vm736_vm0, %v349_v56 }
 0x1b7   : > { %v415_v61 = vpop.trf.xlu2 }
 0x1b8   : > { %v286_v22 = vpop.trf.xlu0  ;;  %832 = vst.msk [vmem:[%s1327_s12 + $0x2f8] sm:$0xff] %vm736_vm0, %v415_v61 }
 0x1b9   : > { %767 = vst.msk [vmem:[%s1327_s12 + $0xf0] sm:$0xff] %vm736_vm0, %v286_v22  ;;  %v350_v59 = vpop.trf.xlu1 }
 0x1ba   : > { %799 = vst.msk [vmem:[%s1327_s12 + $0x1f0] sm:$0xff] %vm736_vm0, %v350_v59 }
 0x1bf   : > { %v496_v3 = vpop.trf.xlu2 }
 0x1c0   : > { %v287_v25 = vpop.trf.xlu0  ;;  %865 = vst.msk [vmem:[%s1327_s12 + $0x400] sm:$0xff] %vm736_vm0, %v496_v3 }
 0x1c1   : > { %768 = vst.msk [vmem:[%s1327_s12 + $0xf8] sm:$0xff] %vm736_vm0, %v287_v25  ;;  %v351_v62 = vpop.trf.xlu1 }
 0x1c2   : > { %800 = vst.msk [vmem:[%s1327_s12 + $0x1f8] sm:$0xff] %vm736_vm0, %v351_v62 }
 0x1c7   : > { %v497_v6 = vpop.trf.xlu2 }
 0x1c8   : > { %v432_v28 = vpop.trf.xlu0  ;;  %866 = vst.msk [vmem:[%s1327_s12 + $0x408] sm:$0xff] %vm736_vm0, %v497_v6 }
 0x1c9   : > { %833 = vst.msk [vmem:[%s1327_s12 + $0x300] sm:$0xff] %vm736_vm0, %v432_v28  ;;  %v464_v1 = vpop.trf.xlu1 }
 0x1ca   : > { %849 = vst.msk [vmem:[%s1327_s12 + $0x380] sm:$0xff] %vm736_vm0, %v464_v1 }
 0x1cf   : > { %v498_v9 = vpop.trf.xlu2 }
 0x1d0   : > { %v433_v31 = vpop.trf.xlu0  ;;  %867 = vst.msk [vmem:[%s1327_s12 + $0x410] sm:$0xff] %vm736_vm0, %v498_v9 }
 0x1d1   : > { %834 = vst.msk [vmem:[%s1327_s12 + $0x308] sm:$0xff] %vm736_vm0, %v433_v31  ;;  %v465_v4 = vpop.trf.xlu1 }
 0x1d2   : > { %850 = vst.msk [vmem:[%s1327_s12 + $0x388] sm:$0xff] %vm736_vm0, %v465_v4 }
 0x1d7   : > { %v499_v12 = vpop.trf.xlu2 }
 0x1d8   : > { %v434_v34 = vpop.trf.xlu0  ;;  %868 = vst.msk [vmem:[%s1327_s12 + $0x418] sm:$0xff] %vm736_vm0, %v499_v12 }
 0x1d9   : > { %835 = vst.msk [vmem:[%s1327_s12 + $0x310] sm:$0xff] %vm736_vm0, %v434_v34  ;;  %v466_v7 = vpop.trf.xlu1 }
 0x1da   : > { %851 = vst.msk [vmem:[%s1327_s12 + $0x390] sm:$0xff] %vm736_vm0, %v466_v7 }
 0x1df   : > { %v500_v15 = vpop.trf.xlu2 }
 0x1e0   : > { %v435_v37 = vpop.trf.xlu0  ;;  %869 = vst.msk [vmem:[%s1327_s12 + $0x420] sm:$0xff] %vm736_vm0, %v500_v15 }
 0x1e1   : > { %836 = vst.msk [vmem:[%s1327_s12 + $0x318] sm:$0xff] %vm736_vm0, %v435_v37  ;;  %v467_v10 = vpop.trf.xlu1  ;;  %v205_v37 = vld.sshfl [vmem:[#allocation1 + $0x28] sm:$0xff pattern:$0x75316420] }
 0x1e2   : > { %852 = vst.msk [vmem:[%s1327_s12 + $0x398] sm:$0xff] %vm736_vm0, %v467_v10 }
 0x1e7   : > { %v501_v18 = vpop.trf.xlu2 }
 0x1e8   : > { %v436_v40 = vpop.trf.xlu0  ;;  %870 = vst.msk [vmem:[%s1327_s12 + $0x428] sm:$0xff] %vm736_vm0, %v501_v18 }
 0x1e9   : > { %837 = vst.msk [vmem:[%s1327_s12 + $0x320] sm:$0xff] %vm736_vm0, %v436_v40  ;;  %v468_v13 = vpop.trf.xlu1 }
 0x1ea   : > { %853 = vst.msk [vmem:[%s1327_s12 + $0x3a0] sm:$0xff] %vm736_vm0, %v468_v13 }
 0x1ef   : > { %v502_v21 = vpop.trf.xlu2 }
 0x1f0   : > { %v437_v43 = vpop.trf.xlu0  ;;  %871 = vst.msk [vmem:[%s1327_s12 + $0x430] sm:$0xff] %vm736_vm0, %v502_v21 }
 0x1f1   : > { %838 = vst.msk [vmem:[%s1327_s12 + $0x328] sm:$0xff] %vm736_vm0, %v437_v43  ;;  %v469_v16 = vpop.trf.xlu1 }
 0x1f2   : > { %854 = vst.msk [vmem:[%s1327_s12 + $0x3a8] sm:$0xff] %vm736_vm0, %v469_v16 }
 0x1f7   : > { %v503_v24 = vpop.trf.xlu2 }
 0x1f8   : > { %v438_v46 = vpop.trf.xlu0  ;;  %872 = vst.msk [vmem:[%s1327_s12 + $0x438] sm:$0xff] %vm736_vm0, %v503_v24 }
 0x1f9   : > { %839 = vst.msk [vmem:[%s1327_s12 + $0x330] sm:$0xff] %vm736_vm0, %v438_v46  ;;  %v470_v19 = vpop.trf.xlu1 }
 0x1fa   : > { %855 = vst.msk [vmem:[%s1327_s12 + $0x3b0] sm:$0xff] %vm736_vm0, %v470_v19 }
 0x1ff   : > { %v504_v27 = vpop.trf.xlu2 }
 0x200   : > { %v439_v49 = vpop.trf.xlu0  ;;  %873 = vst.msk [vmem:[%s1327_s12 + $0x440] sm:$0xff] %vm736_vm0, %v504_v27 }
 0x201   : > { %840 = vst.msk [vmem:[%s1327_s12 + $0x338] sm:$0xff] %vm736_vm0, %v439_v49  ;;  %v471_v22 = vpop.trf.xlu1 }
 0x202   : > { %856 = vst.msk [vmem:[%s1327_s12 + $0x3b8] sm:$0xff] %vm736_vm0, %v471_v22 }
 0x207   : > { %v505_v30 = vpop.trf.xlu2 }
 0x208   : > { %v440_v53 = vpop.trf.xlu0  ;;  %874 = vst.msk [vmem:[%s1327_s12 + $0x448] sm:$0xff] %vm736_vm0, %v505_v30 }
 0x209   : > { %841 = vst.msk [vmem:[%s1327_s12 + $0x340] sm:$0xff] %vm736_vm0, %v440_v53  ;;  %v472_v25 = vpop.trf.xlu1 }
 0x20a   : > { %857 = vst.msk [vmem:[%s1327_s12 + $0x3c0] sm:$0xff] %vm736_vm0, %v472_v25 }
 0x20f   : > { %v506_v33 = vpop.trf.xlu2 }
 0x210   : > { %v441_v57 = vpop.trf.xlu0  ;;  %875 = vst.msk [vmem:[%s1327_s12 + $0x450] sm:$0xff] %vm736_vm0, %v506_v33 }
 0x211   : > { %842 = vst.msk [vmem:[%s1327_s12 + $0x348] sm:$0xff] %vm736_vm0, %v441_v57  ;;  %v473_v28 = vpop.trf.xlu1 }
 0x212   : > { %858 = vst.msk [vmem:[%s1327_s12 + $0x3c8] sm:$0xff] %vm736_vm0, %v473_v28 }
 0x217   : > { %v507_v36 = vpop.trf.xlu2 }
 0x218   : > { %v442_v60 = vpop.trf.xlu0  ;;  %876 = vst.msk [vmem:[%s1327_s12 + $0x458] sm:$0xff] %vm736_vm0, %v507_v36 }
 0x219   : > { %843 = vst.msk [vmem:[%s1327_s12 + $0x350] sm:$0xff] %vm736_vm0, %v442_v60  ;;  %v474_v31 = vpop.trf.xlu1 }
 0x21a   : > { %859 = vst.msk [vmem:[%s1327_s12 + $0x3d0] sm:$0xff] %vm736_vm0, %v474_v31 }
 0x21f   : > { %v508_v40 = vpop.trf.xlu2 }
 0x220   : > { %v443_v63 = vpop.trf.xlu0  ;;  %877 = vst.msk [vmem:[%s1327_s12 + $0x460] sm:$0xff] %vm736_vm0, %v508_v40 }
 0x221   : > { %844 = vst.msk [vmem:[%s1327_s12 + $0x358] sm:$0xff] %vm736_vm0, %v443_v63  ;;  %v475_v34 = vpop.trf.xlu1 }
 0x222   : > { %860 = vst.msk [vmem:[%s1327_s12 + $0x3d8] sm:$0xff] %vm736_vm0, %v475_v34 }
 0x224   : > { %608 = vxpose.xlu0.b32.start.end [1/1] (short) %v204_v0, 128 }
 0x225   : > { %640 = vxpose.xlu1.b32.start.end [1/1] (short) %v205_v37, 128 }
 0x226   : > { %672 = vxpose.xlu2.b32.start.end [1/1] (short) %v206_v41, 128 }
 0x227   : > { %v509_v44 = vpop.trf.xlu2 }
 0x228   : > { %v444_v2 = vpop.trf.xlu0  ;;  %878 = vst.msk [vmem:[%s1327_s12 + $0x468] sm:$0xff] %vm736_vm0, %v509_v44 }
 0x229   : > { %845 = vst.msk [vmem:[%s1327_s12 + $0x360] sm:$0xff] %vm736_vm0, %v444_v2  ;;  %v476_v38 = vpop.trf.xlu1 }
 0x22a   : > { %861 = vst.msk [vmem:[%s1327_s12 + $0x3e0] sm:$0xff] %vm736_vm0, %v476_v38 }
 0x22f   : > { %v510_v47 = vpop.trf.xlu2 }
 0x230   : > { %v445_v5 = vpop.trf.xlu0  ;;  %879 = vst.msk [vmem:[%s1327_s12 + $0x470] sm:$0xff] %vm736_vm0, %v510_v47 }
 0x231   : > { %846 = vst.msk [vmem:[%s1327_s12 + $0x368] sm:$0xff] %vm736_vm0, %v445_v5  ;;  %v477_v42 = vpop.trf.xlu1 }
 0x232   : > { %862 = vst.msk [vmem:[%s1327_s12 + $0x3e8] sm:$0xff] %vm736_vm0, %v477_v42 }
 0x237   : > { %v511_v50 = vpop.trf.xlu2 }
 0x238   : > { %v446_v8 = vpop.trf.xlu0  ;;  %880 = vst.msk [vmem:[%s1327_s12 + $0x478] sm:$0xff] %vm736_vm0, %v511_v50 }
 0x239   : > { %847 = vst.msk [vmem:[%s1327_s12 + $0x370] sm:$0xff] %vm736_vm0, %v446_v8  ;;  %v478_v45 = vpop.trf.xlu1 }
 0x23a   : > { %863 = vst.msk [vmem:[%s1327_s12 + $0x3f0] sm:$0xff] %vm736_vm0, %v478_v45 }
 0x23f   : > { %v592_v54 = vpop.trf.xlu2 }
 0x240   : > { %v447_v11 = vpop.trf.xlu0  ;;  %913 = vst.msk [vmem:[%s1327_s12 + $0x580] sm:$0xff] %vm736_vm0, %v592_v54 }
 0x241   : > { %848 = vst.msk [vmem:[%s1327_s12 + $0x378] sm:$0xff] %vm736_vm0, %v447_v11  ;;  %v479_v48 = vpop.trf.xlu1 }
 0x242   : > { %864 = vst.msk [vmem:[%s1327_s12 + $0x3f8] sm:$0xff] %vm736_vm0, %v479_v48 }
 0x247   : > { %v593_v57 = vpop.trf.xlu2 }
 0x248   : > { %v528_v14 = vpop.trf.xlu0  ;;  %914 = vst.msk [vmem:[%s1327_s12 + $0x588] sm:$0xff] %vm736_vm0, %v593_v57 }
 0x249   : > { %881 = vst.msk [vmem:[%s1327_s12 + $0x480] sm:$0xff] %vm736_vm0, %v528_v14  ;;  %v560_v52 = vpop.trf.xlu1 }
 0x24a   : > { %897 = vst.msk [vmem:[%s1327_s12 + $0x500] sm:$0xff] %vm736_vm0, %v560_v52 }
 0x24f   : > { %v594_v60 = vpop.trf.xlu2 }
 0x250   : > { %v529_v17 = vpop.trf.xlu0  ;;  %915 = vst.msk [vmem:[%s1327_s12 + $0x590] sm:$0xff] %vm736_vm0, %v594_v60 }
 0x251   : > { %882 = vst.msk [vmem:[%s1327_s12 + $0x488] sm:$0xff] %vm736_vm0, %v529_v17  ;;  %v561_v55 = vpop.trf.xlu1 }
 0x252   : > { %898 = vst.msk [vmem:[%s1327_s12 + $0x508] sm:$0xff] %vm736_vm0, %v561_v55 }
 0x257   : > { %v595_v63 = vpop.trf.xlu2 }
 0x258   : > { %v530_v20 = vpop.trf.xlu0  ;;  %916 = vst.msk [vmem:[%s1327_s12 + $0x598] sm:$0xff] %vm736_vm0, %v595_v63 }
 0x259   : > { %883 = vst.msk [vmem:[%s1327_s12 + $0x490] sm:$0xff] %vm736_vm0, %v530_v20  ;;  %v562_v58 = vpop.trf.xlu1 }
 0x25a   : > { %899 = vst.msk [vmem:[%s1327_s12 + $0x510] sm:$0xff] %vm736_vm0, %v562_v58 }
 0x25f   : > { %v596_v2 = vpop.trf.xlu2 }
 0x260   : > { %v531_v23 = vpop.trf.xlu0  ;;  %917 = vst.msk [vmem:[%s1327_s12 + $0x5a0] sm:$0xff] %vm736_vm0, %v596_v2 }
 0x261   : > { %884 = vst.msk [vmem:[%s1327_s12 + $0x498] sm:$0xff] %vm736_vm0, %v531_v23  ;;  %v563_v61 = vpop.trf.xlu1 }
 0x262   : > { %900 = vst.msk [vmem:[%s1327_s12 + $0x518] sm:$0xff] %vm736_vm0, %v563_v61 }
 0x267   : > { %v597_v5 = vpop.trf.xlu2 }
 0x268   : > { %v532_v26 = vpop.trf.xlu0  ;;  %918 = vst.msk [vmem:[%s1327_s12 + $0x5a8] sm:$0xff] %vm736_vm0, %v597_v5 }
 0x269   : > { %885 = vst.msk [vmem:[%s1327_s12 + $0x4a0] sm:$0xff] %vm736_vm0, %v532_v26  ;;  %v564_v0 = vpop.trf.xlu1 }
 0x26a   : > { %901 = vst.msk [vmem:[%s1327_s12 + $0x520] sm:$0xff] %vm736_vm0, %v564_v0 }
 0x26f   : > { %v598_v8 = vpop.trf.xlu2 }
 0x270   : > { %v533_v29 = vpop.trf.xlu0  ;;  %919 = vst.msk [vmem:[%s1327_s12 + $0x5b0] sm:$0xff] %vm736_vm0, %v598_v8 }
 0x271   : > { %886 = vst.msk [vmem:[%s1327_s12 + $0x4a8] sm:$0xff] %vm736_vm0, %v533_v29  ;;  %v565_v3 = vpop.trf.xlu1 }
 0x272   : > { %902 = vst.msk [vmem:[%s1327_s12 + $0x528] sm:$0xff] %vm736_vm0, %v565_v3 }
 0x277   : > { %v599_v11 = vpop.trf.xlu2 }
 0x278   : > { %v534_v32 = vpop.trf.xlu0  ;;  %920 = vst.msk [vmem:[%s1327_s12 + $0x5b8] sm:$0xff] %vm736_vm0, %v599_v11 }
 0x279   : > { %887 = vst.msk [vmem:[%s1327_s12 + $0x4b0] sm:$0xff] %vm736_vm0, %v534_v32  ;;  %v566_v6 = vpop.trf.xlu1 }
 0x27a   : > { %903 = vst.msk [vmem:[%s1327_s12 + $0x530] sm:$0xff] %vm736_vm0, %v566_v6 }
 0x27f   : > { %v600_v14 = vpop.trf.xlu2 }
 0x280   : > { %v535_v35 = vpop.trf.xlu0  ;;  %921 = vst.msk [vmem:[%s1327_s12 + $0x5c0] sm:$0xff] %vm736_vm0, %v600_v14 }
 0x281   : > { %888 = vst.msk [vmem:[%s1327_s12 + $0x4b8] sm:$0xff] %vm736_vm0, %v535_v35  ;;  %v567_v9 = vpop.trf.xlu1 }
 0x282   : > { %904 = vst.msk [vmem:[%s1327_s12 + $0x538] sm:$0xff] %vm736_vm0, %v567_v9 }
 0x287   : > { %v601_v17 = vpop.trf.xlu2 }
 0x288   : > { %v536_v39 = vpop.trf.xlu0  ;;  %922 = vst.msk [vmem:[%s1327_s12 + $0x5c8] sm:$0xff] %vm736_vm0, %v601_v17 }
 0x289   : > { %889 = vst.msk [vmem:[%s1327_s12 + $0x4c0] sm:$0xff] %vm736_vm0, %v536_v39  ;;  %v568_v12 = vpop.trf.xlu1 }
 0x28a   : > { %905 = vst.msk [vmem:[%s1327_s12 + $0x540] sm:$0xff] %vm736_vm0, %v568_v12 }
 0x28f   : > { %v602_v20 = vpop.trf.xlu2 }
 0x290   : > { %v537_v43 = vpop.trf.xlu0  ;;  %923 = vst.msk [vmem:[%s1327_s12 + $0x5d0] sm:$0xff] %vm736_vm0, %v602_v20 }
 0x291   : > { %890 = vst.msk [vmem:[%s1327_s12 + $0x4c8] sm:$0xff] %vm736_vm0, %v537_v43  ;;  %v569_v15 = vpop.trf.xlu1 }
 0x292   : > { %906 = vst.msk [vmem:[%s1327_s12 + $0x548] sm:$0xff] %vm736_vm0, %v569_v15 }
 0x297   : > { %v603_v23 = vpop.trf.xlu2 }
 0x298   : > { %v538_v46 = vpop.trf.xlu0  ;;  %924 = vst.msk [vmem:[%s1327_s12 + $0x5d8] sm:$0xff] %vm736_vm0, %v603_v23 }
 0x299   : > { %891 = vst.msk [vmem:[%s1327_s12 + $0x4d0] sm:$0xff] %vm736_vm0, %v538_v46  ;;  %v570_v18 = vpop.trf.xlu1 }
 0x29a   : > { %907 = vst.msk [vmem:[%s1327_s12 + $0x550] sm:$0xff] %vm736_vm0, %v570_v18 }
 0x29f   : > { %v604_v26 = vpop.trf.xlu2 }
 0x2a0   : > { %v539_v49 = vpop.trf.xlu0  ;;  %925 = vst.msk [vmem:[%s1327_s12 + $0x5e0] sm:$0xff] %vm736_vm0, %v604_v26 }
 0x2a1   : > { %892 = vst.msk [vmem:[%s1327_s12 + $0x4d8] sm:$0xff] %vm736_vm0, %v539_v49  ;;  %v571_v21 = vpop.trf.xlu1 }
 0x2a2   : > { %908 = vst.msk [vmem:[%s1327_s12 + $0x558] sm:$0xff] %vm736_vm0, %v571_v21 }
 0x2a4   : > { %704 = vxpose.xlu0.b32.start.end [1/1] (short) %v207_v51, 128 }
 0x2a7   : > { %v605_v29 = vpop.trf.xlu2 }
 0x2a8   : > { %v540_v53 = vpop.trf.xlu0  ;;  %926 = vst.msk [vmem:[%s1327_s12 + $0x5e8] sm:$0xff] %vm736_vm0, %v605_v29 }
 0x2a9   : > { %893 = vst.msk [vmem:[%s1327_s12 + $0x4e0] sm:$0xff] %vm736_vm0, %v540_v53  ;;  %v572_v24 = vpop.trf.xlu1 }
 0x2aa   : > { %909 = vst.msk [vmem:[%s1327_s12 + $0x560] sm:$0xff] %vm736_vm0, %v572_v24 }
 0x2af   : > { %v606_v32 = vpop.trf.xlu2 }
 0x2b0   : > { %v541_v56 = vpop.trf.xlu0  ;;  %927 = vst.msk [vmem:[%s1327_s12 + $0x5f0] sm:$0xff] %vm736_vm0, %v606_v32 }
 0x2b1   : > { %894 = vst.msk [vmem:[%s1327_s12 + $0x4e8] sm:$0xff] %vm736_vm0, %v541_v56  ;;  %v573_v27 = vpop.trf.xlu1 }
 0x2b2   : > { %910 = vst.msk [vmem:[%s1327_s12 + $0x568] sm:$0xff] %vm736_vm0, %v573_v27 }
 0x2b7   : > { %v607_v35 = vpop.trf.xlu2 }
 0x2b8   : > { %v542_v59 = vpop.trf.xlu0  ;;  %928 = vst.msk [vmem:[%s1327_s12 + $0x5f8] sm:$0xff] %vm736_vm0, %v607_v35 }
 0x2b9   : > { %895 = vst.msk [vmem:[%s1327_s12 + $0x4f0] sm:$0xff] %vm736_vm0, %v542_v59  ;;  %v574_v30 = vpop.trf.xlu1 }
 0x2ba   : > { %911 = vst.msk [vmem:[%s1327_s12 + $0x570] sm:$0xff] %vm736_vm0, %v574_v30 }
 0x2bf   : > { %v688_v38 = vpop.trf.xlu2 }
 0x2c0   : > { %v543_v62 = vpop.trf.xlu0  ;;  %961 = vst.msk [vmem:[%s1327_s12 + $0x700] sm:$0xff] %vm736_vm0, %v688_v38 }
 0x2c1   : > { %896 = vst.msk [vmem:[%s1327_s12 + $0x4f8] sm:$0xff] %vm736_vm0, %v543_v62  ;;  %v575_v33 = vpop.trf.xlu1 }
 0x2c2   : > { %912 = vst.msk [vmem:[%s1327_s12 + $0x578] sm:$0xff] %vm736_vm0, %v575_v33 }
 0x2c7   : > { %v689_v41 = vpop.trf.xlu2 }
 0x2c8   : > { %v624_v1 = vpop.trf.xlu0  ;;  %962 = vst.msk [vmem:[%s1327_s12 + $0x708] sm:$0xff] %vm736_vm0, %v689_v41 }
 0x2c9   : > { %929 = vst.msk [vmem:[%s1327_s12 + $0x600] sm:$0xff] %vm736_vm0, %v624_v1  ;;  %v656_v36 = vpop.trf.xlu1 }
 0x2ca   : > { %945 = vst.msk [vmem:[%s1327_s12 + $0x680] sm:$0xff] %vm736_vm0, %v656_v36 }
 0x2cf   : > { %v690_v44 = vpop.trf.xlu2 }
 0x2d0   : > { %v625_v4 = vpop.trf.xlu0  ;;  %963 = vst.msk [vmem:[%s1327_s12 + $0x710] sm:$0xff] %vm736_vm0, %v690_v44 }
 0x2d1   : > { %930 = vst.msk [vmem:[%s1327_s12 + $0x608] sm:$0xff] %vm736_vm0, %v625_v4  ;;  %v657_v39 = vpop.trf.xlu1 }
 0x2d2   : > { %946 = vst.msk [vmem:[%s1327_s12 + $0x688] sm:$0xff] %vm736_vm0, %v657_v39 }
 0x2d7   : > { %v691_v47 = vpop.trf.xlu2 }
 0x2d8   : > { %v626_v7 = vpop.trf.xlu0  ;;  %964 = vst.msk [vmem:[%s1327_s12 + $0x718] sm:$0xff] %vm736_vm0, %v691_v47 }
 0x2d9   : > { %931 = vst.msk [vmem:[%s1327_s12 + $0x610] sm:$0xff] %vm736_vm0, %v626_v7  ;;  %v658_v42 = vpop.trf.xlu1 }
 0x2da   : > { %947 = vst.msk [vmem:[%s1327_s12 + $0x690] sm:$0xff] %vm736_vm0, %v658_v42 }
 0x2df   : > { %v692_v50 = vpop.trf.xlu2 }
 0x2e0   : > { %v627_v10 = vpop.trf.xlu0  ;;  %965 = vst.msk [vmem:[%s1327_s12 + $0x720] sm:$0xff] %vm736_vm0, %v692_v50 }
 0x2e1   : > { %932 = vst.msk [vmem:[%s1327_s12 + $0x618] sm:$0xff] %vm736_vm0, %v627_v10  ;;  %v659_v45 = vpop.trf.xlu1 }
 0x2e2   : > { %948 = vst.msk [vmem:[%s1327_s12 + $0x698] sm:$0xff] %vm736_vm0, %v659_v45 }
 0x2e7   : > { %v693_v53 = vpop.trf.xlu2 }
 0x2e8   : > { %v628_v13 = vpop.trf.xlu0  ;;  %966 = vst.msk [vmem:[%s1327_s12 + $0x728] sm:$0xff] %vm736_vm0, %v693_v53 }
 0x2e9   : > { %933 = vst.msk [vmem:[%s1327_s12 + $0x620] sm:$0xff] %vm736_vm0, %v628_v13  ;;  %v660_v48 = vpop.trf.xlu1 }
 0x2ea   : > { %949 = vst.msk [vmem:[%s1327_s12 + $0x6a0] sm:$0xff] %vm736_vm0, %v660_v48 }
 0x2ef   : > { %v694_v56 = vpop.trf.xlu2 }
 0x2f0   : > { %v629_v16 = vpop.trf.xlu0  ;;  %967 = vst.msk [vmem:[%s1327_s12 + $0x730] sm:$0xff] %vm736_vm0, %v694_v56 }
 0x2f1   : > { %934 = vst.msk [vmem:[%s1327_s12 + $0x628] sm:$0xff] %vm736_vm0, %v629_v16  ;;  %v661_v51 = vpop.trf.xlu1 }
 0x2f2   : > { %950 = vst.msk [vmem:[%s1327_s12 + $0x6a8] sm:$0xff] %vm736_vm0, %v661_v51 }
 0x2f7   : > { %v695_v59 = vpop.trf.xlu2 }
 0x2f8   : > { %v630_v19 = vpop.trf.xlu0  ;;  %968 = vst.msk [vmem:[%s1327_s12 + $0x738] sm:$0xff] %vm736_vm0, %v695_v59 }
 0x2f9   : > { %935 = vst.msk [vmem:[%s1327_s12 + $0x630] sm:$0xff] %vm736_vm0, %v630_v19  ;;  %v662_v54 = vpop.trf.xlu1 }
 0x2fa   : > { %951 = vst.msk [vmem:[%s1327_s12 + $0x6b0] sm:$0xff] %vm736_vm0, %v662_v54 }
 0x2ff   : > { %v696_v62 = vpop.trf.xlu2 }
 0x300   : > { %v631_v22 = vpop.trf.xlu0  ;;  %969 = vst.msk [vmem:[%s1327_s12 + $0x740] sm:$0xff] %vm736_vm0, %v696_v62 }
 0x301   : > { %936 = vst.msk [vmem:[%s1327_s12 + $0x638] sm:$0xff] %vm736_vm0, %v631_v22  ;;  %v663_v57 = vpop.trf.xlu1 }
 0x302   : > { %952 = vst.msk [vmem:[%s1327_s12 + $0x6b8] sm:$0xff] %vm736_vm0, %v663_v57 }
 0x307   : > { %v697_v1 = vpop.trf.xlu2 }
 0x308   : > { %v632_v25 = vpop.trf.xlu0  ;;  %970 = vst.msk [vmem:[%s1327_s12 + $0x748] sm:$0xff] %vm736_vm0, %v697_v1 }
 0x309   : > { %937 = vst.msk [vmem:[%s1327_s12 + $0x640] sm:$0xff] %vm736_vm0, %v632_v25  ;;  %v664_v60 = vpop.trf.xlu1 }
 0x30a   : > { %953 = vst.msk [vmem:[%s1327_s12 + $0x6c0] sm:$0xff] %vm736_vm0, %v664_v60 }
 0x30f   : > { %v698_v4 = vpop.trf.xlu2 }
 0x310   : > { %v633_v28 = vpop.trf.xlu0  ;;  %971 = vst.msk [vmem:[%s1327_s12 + $0x750] sm:$0xff] %vm736_vm0, %v698_v4 }
 0x311   : > { %938 = vst.msk [vmem:[%s1327_s12 + $0x648] sm:$0xff] %vm736_vm0, %v633_v28  ;;  %v665_v63 = vpop.trf.xlu1 }
 0x312   : > { %954 = vst.msk [vmem:[%s1327_s12 + $0x6c8] sm:$0xff] %vm736_vm0, %v665_v63 }
 0x317   : > { %v699_v7 = vpop.trf.xlu2 }
 0x318   : > { %v634_v31 = vpop.trf.xlu0  ;;  %972 = vst.msk [vmem:[%s1327_s12 + $0x758] sm:$0xff] %vm736_vm0, %v699_v7 }
 0x319   : > { %939 = vst.msk [vmem:[%s1327_s12 + $0x650] sm:$0xff] %vm736_vm0, %v634_v31  ;;  %v666_v2 = vpop.trf.xlu1 }
 0x31a   : > { %955 = vst.msk [vmem:[%s1327_s12 + $0x6d0] sm:$0xff] %vm736_vm0, %v666_v2 }
 0x31f   : > { %v700_v10 = vpop.trf.xlu2 }
 0x320   : > { %v635_v34 = vpop.trf.xlu0  ;;  %973 = vst.msk [vmem:[%s1327_s12 + $0x760] sm:$0xff] %vm736_vm0, %v700_v10 }
 0x321   : > { %940 = vst.msk [vmem:[%s1327_s12 + $0x658] sm:$0xff] %vm736_vm0, %v635_v34  ;;  %v667_v5 = vpop.trf.xlu1 }
 0x322   : > { %956 = vst.msk [vmem:[%s1327_s12 + $0x6d8] sm:$0xff] %vm736_vm0, %v667_v5 }
 0x327   : > { %v701_v13 = vpop.trf.xlu2 }
 0x328   : > { %v636_v37 = vpop.trf.xlu0  ;;  %974 = vst.msk [vmem:[%s1327_s12 + $0x768] sm:$0xff] %vm736_vm0, %v701_v13 }
 0x329   : > { %941 = vst.msk [vmem:[%s1327_s12 + $0x660] sm:$0xff] %vm736_vm0, %v636_v37  ;;  %v668_v8 = vpop.trf.xlu1 }
 0x32a   : > { %957 = vst.msk [vmem:[%s1327_s12 + $0x6e0] sm:$0xff] %vm736_vm0, %v668_v8 }
 0x32f   : > { %v702_v16 = vpop.trf.xlu2 }
 0x330   : > { %v637_v40 = vpop.trf.xlu0  ;;  %975 = vst.msk [vmem:[%s1327_s12 + $0x770] sm:$0xff] %vm736_vm0, %v702_v16 }
 0x331   : > { %942 = vst.msk [vmem:[%s1327_s12 + $0x668] sm:$0xff] %vm736_vm0, %v637_v40  ;;  %v669_v11 = vpop.trf.xlu1 }
 0x332   : > { %958 = vst.msk [vmem:[%s1327_s12 + $0x6e8] sm:$0xff] %vm736_vm0, %v669_v11 }
 0x337   : > { %v703_v19 = vpop.trf.xlu2 }
 0x338   : > { %v638_v43 = vpop.trf.xlu0  ;;  %976 = vst.msk [vmem:[%s1327_s12 + $0x778] sm:$0xff] %vm736_vm0, %v703_v19 }
 0x339   : > { %943 = vst.msk [vmem:[%s1327_s12 + $0x670] sm:$0xff] %vm736_vm0, %v638_v43  ;;  %v670_v14 = vpop.trf.xlu1 }
 0x33a   : > { %959 = vst.msk [vmem:[%s1327_s12 + $0x6f0] sm:$0xff] %vm736_vm0, %v670_v14 }
 0x340   : > { %v639_v46 = vpop.trf.xlu0 }
 0x341   : > { %944 = vst.msk [vmem:[%s1327_s12 + $0x678] sm:$0xff] %vm736_vm0, %v639_v46  ;;  %v671_v17 = vpop.trf.xlu1 }
 0x342   : > { %960 = vst.msk [vmem:[%s1327_s12 + $0x6f8] sm:$0xff] %vm736_vm0, %v671_v17 }
 0x348   : > { %v720_v49 = vpop.trf.xlu0 }
 0x349   : > { %977 = vst.msk [vmem:[%s1327_s12 + $0x780] sm:$0xff] %vm736_vm0, %v720_v49 }
 0x350   : > { %v721_v52 = vpop.trf.xlu0 }
 0x351   : > { %978 = vst.msk [vmem:[%s1327_s12 + $0x788] sm:$0xff] %vm736_vm0, %v721_v52 }
 0x358   : > { %v722_v55 = vpop.trf.xlu0 }
 0x359   : > { %979 = vst.msk [vmem:[%s1327_s12 + $0x790] sm:$0xff] %vm736_vm0, %v722_v55 }
 0x360   : > { %v723_v58 = vpop.trf.xlu0 }
 0x361   : > { %980 = vst.msk [vmem:[%s1327_s12 + $0x798] sm:$0xff] %vm736_vm0, %v723_v58 }
 0x368   : > { %v724_v61 = vpop.trf.xlu0 }
 0x369   : > { %981 = vst.msk [vmem:[%s1327_s12 + $0x7a0] sm:$0xff] %vm736_vm0, %v724_v61 }
 0x370   : > { %v725_v0 = vpop.trf.xlu0 }
 0x371   : > { %982 = vst.msk [vmem:[%s1327_s12 + $0x7a8] sm:$0xff] %vm736_vm0, %v725_v0 }
 0x378   : > { %v726_v3 = vpop.trf.xlu0 }
 0x379   : > { %983 = vst.msk [vmem:[%s1327_s12 + $0x7b0] sm:$0xff] %vm736_vm0, %v726_v3 }
 0x380   : > { %v727_v6 = vpop.trf.xlu0 }
 0x381   : > { %984 = vst.msk [vmem:[%s1327_s12 + $0x7b8] sm:$0xff] %vm736_vm0, %v727_v6 }
 0x388   : > { %v728_v9 = vpop.trf.xlu0 }
 0x389   : > { %985 = vst.msk [vmem:[%s1327_s12 + $0x7c0] sm:$0xff] %vm736_vm0, %v728_v9 }
 0x390   : > { %v729_v12 = vpop.trf.xlu0 }
 0x391   : > { %986 = vst.msk [vmem:[%s1327_s12 + $0x7c8] sm:$0xff] %vm736_vm0, %v729_v12 }
 0x398   : > { %v730_v15 = vpop.trf.xlu0 }
 0x399   : > { %987 = vst.msk [vmem:[%s1327_s12 + $0x7d0] sm:$0xff] %vm736_vm0, %v730_v15 }
 0x3a0   : > { %v731_v18 = vpop.trf.xlu0 }
 0x3a1   : > { %988 = vst.msk [vmem:[%s1327_s12 + $0x7d8] sm:$0xff] %vm736_vm0, %v731_v18 }
 0x3a8   : > { %v732_v20 = vpop.trf.xlu0 }
 0x3a9   : > { %989 = vst.msk [vmem:[%s1327_s12 + $0x7e0] sm:$0xff] %vm736_vm0, %v732_v20 }
 0x3b0   : > { %v733_v21 = vpop.trf.xlu0 }
 0x3b1   : > { %990 = vst.msk [vmem:[%s1327_s12 + $0x7e8] sm:$0xff] %vm736_vm0, %v733_v21 }
 0x3b8   : > { %v734_v22 = vpop.trf.xlu0 }
 0x3b9   : > { %991 = vst.msk [vmem:[%s1327_s12 + $0x7f0] sm:$0xff] %vm736_vm0, %v734_v22 }
 0x3c0   : > { %v735_v23 = vpop.trf.xlu0 }
 0x3c1   : > { %992 = vst.msk [vmem:[%s1327_s12 + $0x7f8] sm:$0xff] %vm736_vm0, %v735_v23 }
 0x3c2 PF: > { %s14_s11 = sadd.s32 1, %s1239_s11   ;;  %s1867_s6 = smov %s1223_s7 }
 0x3c3   : > { %p11_p0 = scmp.ge.s32.totalorder %s14_s11, 4   ;;  %s1868_s7 = smov %s1227_s8 }
 0x3c4   : > { %s1869_s8 = smov %s1300_s18  ;;  %s1870_s9 = smov %s1235_s10 }
 0x3c5   : > { %s1871_s10 = smov %s1873_s13  ;;  %13 = sbr.rel (!%p11_p0) target bundleno = 4 (0x4), region = 67 }
 0x3ca   :  { %1023 = vsyncpa [#allocation3], 1 }
 0x3cb   :  { %1025 = vsyncpa [#allocation3 + $0x1], 1 }

</bundles_post_ra>
